<compile_context>
chip_gen: v5e
topology: v5e:2x2
jax: 0.10.0
libtpu: 0.0.40
codegen_flags: <defaults>
</compile_context>

<pallas_src>
import jax
import jax.numpy as jnp
from jax import lax
from jax.experimental import pallas as pl
from jax.experimental.pallas import tpu as pltpu

INPUT_SIZE = 784
NUM_CLASSES = 10
LANES = 128
DEFAULT_TILE_B = 2048  # rows of x per grid step (multiple of 8 sublanes)


def linear_kernel(x_ref, w_ref, b_ref, o_ref):
    # x_ref: (TB, 784)   VMEM
    # w_ref: (784, 128)  VMEM  (pre-transposed, zero-padded out-features) - resident
    # b_ref: (1, 128)    VMEM  - resident
    # o_ref: (TB, 128)   VMEM
    acc = lax.dot_general(
        x_ref[...],
        w_ref[...],
        dimension_numbers=(((1,), (0,)), ((), ())),  # (TB,784) @ (784,128)
        preferred_element_type=jnp.float32,
    )
    o_ref[...] = (acc + b_ref[...]).astype(o_ref.dtype)


def prepare_params(weight, bias, *, lanes=LANES):
    """One-time parameter prep (call once, reuse every forward).

    weight: (num_classes, input_size) float32, PyTorch layout.
    bias:   (num_classes,)            float32
    Returns (w_p, b_p) with w_p (input_size, lanes) and b_p (1, lanes),
    zero-padded on the output/feature dim so stores stay lane-dense.
    """
    out_features, in_features = weight.shape
    out_pad = ((out_features + lanes - 1) // lanes) * lanes
    w_p = (
        jnp.zeros((in_features, out_pad), weight.dtype)
        .at[:, :out_features]
        .set(weight.T)
    )
    b_p = jnp.zeros((1, out_pad), bias.dtype).at[0, :out_features].set(bias)
    return w_p, b_p


def net_forward(x, w_p, b_p, *, tile_b=DEFAULT_TILE_B, num_classes=NUM_CLASSES):
    """Forward pass of Net: fc1(x) = x @ W^T + b.

    x:   (B, input_size)         float32
    w_p: (input_size, out_pad)   float32  (from prepare_params)
    b_p: (1, out_pad)            float32  (from prepare_params)
    """
    B, in_features = x.shape
    out_pad = w_p.shape[1]

    # Batch tile: at most tile_b rows; cap at round8(cdiv(B, 2)) so moderate
    # batches always give >= 2 grid steps (megacore sharding on v7x).
    half = -(-B // 2)  # cdiv(B, 2)
    tb = min(tile_b, ((half + 7) // 8) * 8)
    tb = max(8, tb)

    grid = (pl.cdiv(B, tb),)  # last block may be partial; Pallas masks OOB stores

    flops = 2 * B * in_features * out_pad
    bytes_accessed = 4 * (
        B * in_features + in_features * out_pad + out_pad + B * out_pad
    )

    out = pl.pallas_call(
        linear_kernel,
        out_shape=jax.ShapeDtypeStruct((B, out_pad), jnp.float32),
        grid=grid,
        in_specs=[
            pl.BlockSpec((tb, in_features), lambda i: (i, 0)),        # x: batch-tiled
            pl.BlockSpec((in_features, out_pad), lambda i: (0, 0)),   # weight: resident
            pl.BlockSpec((1, out_pad), lambda i: (0, 0)),             # bias: resident
        ],
        out_specs=pl.BlockSpec((tb, out_pad), lambda i: (i, 0)),
        compiler_params=pltpu.CompilerParams(
            dimension_semantics=("parallel",),   # shard batch tiles across TCs
            vmem_limit_bytes=48 << 20,           # room for 2048-row double-buffered tiles
        ),
        cost_estimate=pl.CostEstimate(
            flops=flops, transcendentals=0, bytes_accessed=bytes_accessed
        ),
    )(x, w_p, b_p)

    # Rows are exact (no batch padding); only the padded class columns are sliced.
    # Padded columns 10..127 are exactly zero - never softmax/argmax over them.
    return out[:, :num_classes]


def init_params(key, input_size=INPUT_SIZE, num_classes=NUM_CLASSES):
    """Deterministic init matching nn.Linear's default: U(-1/sqrt(in), 1/sqrt(in))."""
    kw, kb = jax.random.split(key)
    bound = 1.0 / jnp.sqrt(float(input_size))
    weight = jax.random.uniform(
        kw, (num_classes, input_size), jnp.float32, minval=-bound, maxval=bound
    )
    bias = jax.random.uniform(
        kb, (num_classes,), jnp.float32, minval=-bound, maxval=bound
    )
    return weight, bias


if __name__ == "__main__":
    key = jax.random.PRNGKey(0)
    k_x, k_p = jax.random.split(key)

    weight, bias = init_params(k_p)
    w_p, b_p = prepare_params(weight, bias)  # one-time param prep

    # Case 1: small batch, 2 full tiles (exercises batch tiling + resident params).
    B1 = 16
    x1 = jax.random.normal(k_x, (B1, INPUT_SIZE), jnp.float32)
    out1 = jax.block_until_ready(net_forward(x1, w_p, b_p))
    ref1 = x1 @ weight.T + bias
    assert out1.shape == (B1, NUM_CLASSES)
    assert jnp.allclose(out1, ref1, atol=1e-4, rtol=1e-4)

    # Case 2: non-multiple batch (exercises the partial final block, no padding).
    B2 = 13
    x2 = jax.random.normal(jax.random.fold_in(k_x, 1), (B2, INPUT_SIZE), jnp.float32)
    out2 = jax.block_until_ready(net_forward(x2, w_p, b_p))
    ref2 = x2 @ weight.T + bias
    assert out2.shape == (B2, NUM_CLASSES)
    assert jnp.allclose(out2, ref2, atol=1e-4, rtol=1e-4)

    print("KERNEL_OK")
</pallas_src>

<mosaic_0001>
module attributes {stable_mosaic.version = 11 : i64} {
  func.func @linear_kernel(%arg0: i32, %arg1: memref<8x784xf32, #tpu.memory_space<vmem>>, %arg2: memref<784x128xf32, #tpu.memory_space<vmem>>, %arg3: memref<1x128xf32, #tpu.memory_space<vmem>>, %arg4: memref<8x128xf32, #tpu.memory_space<vmem>>) attributes {dimension_semantics = [#tpu.dimension_semantics<parallel>], iteration_bounds = array<i64: 2>, scalar_prefetch = 0 : i64, scratch_operands = 0 : i64, tpu.core_type = #tpu.core_type<tc>, window_params = [{transform_indices = @transform_0, window_bounds = array<i64: 8, 784>}, {pipeline_mode = #tpu.pipeline_mode<synchronous>, transform_indices = @transform_1, window_bounds = array<i64: 784, 128>}, {pipeline_mode = #tpu.pipeline_mode<synchronous>, transform_indices = @transform_2, window_bounds = array<i64: 1, 128>}, {transform_indices = @transform_3, window_bounds = array<i64: 8, 128>}]} {
    %c0 = arith.constant 0 : index
    %c0_0 = arith.constant 0 : index
    %0 = vector.load %arg1[%c0, %c0_0] : memref<8x784xf32, #tpu.memory_space<vmem>>, vector<8x784xf32>
    %c0_1 = arith.constant 0 : index
    %c0_2 = arith.constant 0 : index
    %1 = vector.load %arg2[%c0_1, %c0_2] : memref<784x128xf32, #tpu.memory_space<vmem>>, vector<784x128xf32>
    %cst = arith.constant dense<0.000000e+00> : vector<8x128xf32>
    %2 = tpu.matmul %0, %1, %cst {dimension_numbers = #tpu.dot_dimension_numbers<[1], [0], [0], [1], [0, 0, 1, 1], [], []>} : vector<8x784xf32>, vector<784x128xf32>, vector<8x128xf32> -> vector<8x128xf32>
    %c0_3 = arith.constant 0 : index
    %c0_4 = arith.constant 0 : index
    %3 = vector.load %arg3[%c0_3, %c0_4] : memref<1x128xf32, #tpu.memory_space<vmem>>, vector<1x128xf32>
    %4 = vector.broadcast %3 : vector<1x128xf32> to vector<8x128xf32>
    %5 = arith.addf %2, %4 : vector<8x128xf32>
    %c0_5 = arith.constant 0 : index
    %c0_6 = arith.constant 0 : index
    %6 = vector.load %arg4[%c0_5, %c0_6] : memref<8x128xf32, #tpu.memory_space<vmem>>, vector<8x128xf32>
    tpu.vector_store %arg4[%c0_5, %c0_6], %5 {strides = array<i32>} : memref<8x128xf32, #tpu.memory_space<vmem>>, vector<8x128xf32>,
    return
  }
  func.func @transform_0(%arg0: i32) -> (i32, i32) {
    %c0_i32 = arith.constant 0 : i32
    %c0_i32_0 = arith.constant 0 : i32
    return %arg0, %c0_i32 : i32, i32
  }
  func.func @transform_1(%arg0: i32) -> (i32, i32) {
    %c0_i32 = arith.constant 0 : i32
    %c0_i32_0 = arith.constant 0 : i32
    %c0_i32_1 = arith.constant 0 : i32
    return %c0_i32, %c0_i32_0 : i32, i32
  }
  func.func @transform_2(%arg0: i32) -> (i32, i32) {
    %c0_i32 = arith.constant 0 : i32
    %c0_i32_0 = arith.constant 0 : i32
    %c0_i32_1 = arith.constant 0 : i32
    return %c0_i32, %c0_i32_0 : i32, i32
  }
  func.func @transform_3(%arg0: i32) -> (i32, i32) {
    %c0_i32 = arith.constant 0 : i32
    %c0_i32_0 = arith.constant 0 : i32
    return %arg0, %c0_i32 : i32, i32
  }
}

</mosaic_0001>

<bundles_post_ra>
// kernel: tpu_custom_call.1
= control target key start
LH: loop header
LB: loop body
LE: loop exit
PB: predicated region body
PF: predicated region fallthrough
CT: control target
= control target key end

     0   :  { %8 = vsyncpa [#allocation3], 0  ;;  %s936_s0 = inlined_call_operand.hbm [shape: f32[16,784], index: 0, kind: input, shape index: {}]   ;;  %s937_s1 = inlined_call_operand.hbm [shape: f32[784,128], index: 1, kind: input, shape index: {}]   ;;  %s938_s2 = inlined_call_operand.vmem [shape: f32[1,128], index: 2, kind: input, shape index: {}]   ;;  %s939_s3 = inlined_call_operand.hbm [shape: f32[16,128], index: 3, kind: output, shape index: {}]  }
   0x1   :  { %10 = vsyncpa [#allocation3 + $0x1], 0 }
   0x2   :  { %11 = vsyncpa [#allocation6], 0 }
   0x3   :  { %12 = vsyncpa [#allocation4], 0 }
   0x4   :  { %14 = vsyncpa [#allocation4 + $0x1], 0  ;;  %s787_s12 = smov 0   ;;  %s789_s13 = smov 0  }
   0x5   :  { %s791_s14 = smov 0   ;;  %s793_s15 = smov 0  }
   0x6 LB: > { %s130_s18 = sshll.u32 %s937_s1, 4  ;;  %s811_s19 = sadd.s32 4294967295, %s762_s15   ;;  %s762_s15 = sphi %s793_s15, %s949_s15   ;;  %s758_s14 = sphi %s791_s14, %s948_s14   ;;  %s754_s13 = sphi %s789_s13, %s947_s13   ;;  %s750_s12 = sphi %s787_s12, %s946_s12   ;;  %s131_s18 = int_to_ptr.hbm [resolvable:$true] %s130_s18 }
   0x7   : > { %p557_p0 = scmp.ge.s32.totalorder %s762_s15, 1  ;;  %p41_p1 = scmp.eq.s32.totalorder %s811_s19, 0 }
   0x8   : > { %p119_p2 = scmp.lt.s32.totalorder %s762_s15, 3  ;;  %s764_s21 = smov [#allocation5]  }
   0x9   : > { %s132_s22 = sshll.u32 %s764_s21, 4  ;;  %s765_s23 = smov 128   ;;  %s133_s22 = int_to_ptr.vmem [resolvable:$true] %s132_s22 }
   0xa   : > { %p816_p3 = pnand %p557_p0, %p119_p2  ;;  %s766_s24 = smov 8  }
   0xb   : > { %s556_s25 = sadd.s32 4294967294, %s762_s15   ;;  %s827_s26 = sadd.s32 1, %s762_s15  }
   0xc   : > { %p580_p4 = pneg %p816_p3  ;;  %s27_s27 = sadd.s32 1, %s758_s14 }
   0xd   : > { %s24_s28 = ssub.s32 %s762_s15, %s827_s26  ;;  %p34_p7 = scmp.ne.s32.totalorder %s758_s14, %s754_s13 }
   0xe   : > { %p581_p6 = pnand %p580_p4, %p41_p1  ;;  %p25_p8 = scmp.eq.s32.totalorder %s24_s28, 0 }
   0xf   : > { %p35_p9 = scmp.eq.s32.totalorder %s762_s15, 0  ;;  %p40_p10 = scmp.ne.s32.totalorder %s754_s13, %s750_s12 }
  0x10   : > { %583 = dma.hbm_to_vmem [thread:$0]  (!%p581_p6), %s131_s18, 12544, %s133_s22, [#allocation6], %s765_s23, %s765_s23, %s766_s24  }
  0x11   : > { %p106_p11 = scmp.eq.s32.totalorder %s811_s19, 1  ;;  %p36_p12 = por %p35_p9, %p34_p7 }
  0x12   : > { %s839_s29 = scalar_select %p25_p8, %s758_s14, %s27_s27  }
  0x13   : > { %p843_p13 = por %p41_p1, %p40_p10  ;;  %p847_p0 = por %p106_p11, %p34_p7 }
  0x14   : > { %p112_p2 = scmp.eq.s32.totalorder %s556_s25, 1  ;;  %p593_p4 = scmp.lt.s32.totalorder %s762_s15, 2 }
  0x15   : > { %s149_s5 = sand.u32 1, %s758_s14   ;;  %s570_s9 = smul.u32 56, %s762_s15 }
  0x16   : > { %p853_p6 = por %p112_p2, %p40_p10  ;;  %s569_s7 = smul.u32 56, %s149_s5 }
  0x17   : > { %p857_p8 = pnand %p593_p4, %p36_p12  ;;  %s158_s16 = scalar_lea.hbm %s936_s0, %s570_s9 }
  0x18   : > { %s153_s17 = scalar_lea.vmem [#allocation2], %s569_s7  ;;  %s160_s21 = sshll.u32 %s158_s16, 4  ;;  %s161_s21 = int_to_ptr.hbm [resolvable:$true] %s160_s21 }
  0x19   : > { %s162_s18 = sshll.u32 %s153_s17, 4  ;;  %s150_s22 = scalar_lea.sflag [#allocation3], %s149_s5  ;;  %s163_s18 = int_to_ptr.vmem [resolvable:$true] %s162_s18 }
  0x1a   : > { %s662_s23 = sshra.s32 %s161_s21, 4  ;;  %p666_p9 = pneg %p857_p8  ;;  %s663_s23 = int_to_ptr.hbm [resolvable:$true] %s662_s23 }
  0x1b   : > { %s664_s24 = scalar_lea.hbm %s663_s23, 56  ;;  %s669_s28 = scalar_lea.hbm %s936_s0, 112 }
  0x1c   : > { %p665_p7 = scmp.ne.s32.totalorder %s663_s23, %s664_s24  ;;  %p670_p12 = scmp.lt.s32.totalorder %s663_s23, %s936_s0 }
  0x1d   : > { %p671_p2 = scmp.lt.s32.totalorder %s669_s28, %s664_s24 }
  0x1e   : > { %p667_p10 = pnand %p666_p9, %p665_p7 }
  0x1f   : > { %p672_p4 = por %p671_p2, %p670_p12 }
  0x20   : > { %p668_p11 = pneg %p667_p10 }
  0x22   : > { %p673_p5 = pnand %p672_p4, %p668_p11 }
  0x24   : > { %676 = shalt.err (!%p673_p5)
}
  0x25   : > { %587 = dma.hbm_to_vmem [thread:$0]  (!%p857_p8), %s161_s21, 896, %s163_s18, %s150_s22  }
  0x26   : > { %171 = sbr.rel (%p816_p3) target bundleno = 245 (0xf5), region = 32  ;;  %s878_s5 = sand.u32 (!%p816_p3), 1, %s754_s13  }
  0x27   : > { %s571_s7 = smul.u32 (!%p816_p3), 56, %s878_s5  ;;  %s174_s11 = scalar_lea.sflag (!%p816_p3), [#allocation3], %s878_s5 }
  0x29   : > { %s882_s16 = scalar_lea.vmem (!%p816_p3), [#allocation2], %s571_s7 }
  0x2b   : > { %737 = dma.done.wait (%p843_p13), %s174_s11, 896  }
  0x2c   : > { %739 = vsyncadd (%p843_p13), %s174_s11, 4294966400 }
  0x2d   : > { %741 = dma.done.wait (%p41_p1), [#allocation6], 12544  }
  0x2e   : > { %743 = vsyncadd (%p41_p1), [#allocation6], 4294954752  ;;  %v228_v0 = vld [vmem:[#allocation5 + $0x78] sm:$0xff]  ;;  %v227_v1 = vld [vmem:[#allocation5 + $0x70] sm:$0xff]  ;;  %vm315_vm0 = vcmask 130048   ;;  %s563_s8 = sshll.u32 %s878_s5, 3 }
  0x2f   : > { %v244_v2 = vld [vmem:[#allocation5 + $0xf8] sm:$0xff]  ;;  %319 = vmatpush.msra.mxu0 %v228_v0  ;;  %v243_v3 = vld [vmem:[#allocation5 + $0xf0] sm:$0xff]  ;;  %v226_v4 = vld [vmem:[#allocation5 + $0x68] sm:$0xff]  ;;  %s566_s17 = sshll.u32 %s811_s19, 3  ;;  %s205_s23 = scalar_lea.vmem [#allocation7], %s563_s8 }
  0x30   : > { %339 = vmatpush.msra.mxu1 %v244_v2  ;;  %v242_v5 = vld [vmem:[#allocation5 + $0xe8] sm:$0xff]  ;;  %v225_v6 = vld [vmem:[#allocation5 + $0x60] sm:$0xff]  ;;  %v224_v8 = vld [vmem:[#allocation5 + $0x58] sm:$0xff]  ;;  %s471_s22 = scalar_lea.hbm %s939_s3, %s566_s17  ;;  %s473_s24 = sshll.u32 %s205_s23, 4  ;;  %s474_s24 = int_to_ptr.vmem [resolvable:$true] %s473_s24 }
  0x31   : > { %320 = vmatpush.msra.mxu0 %v227_v1  ;;  %v241_v7 = vld [vmem:[#allocation5 + $0xe0] sm:$0xff]  ;;  %v240_v9 = vld [vmem:[#allocation5 + $0xd8] sm:$0xff]  ;;  %v223_v10 = vld [vmem:[#allocation5 + $0x50] sm:$0xff]  ;;  %s475_s25 = sshll.u32 %s471_s22, 4  ;;  %s461_s27 = scalar_lea.sflag [#allocation4], %s878_s5  ;;  %s476_s25 = int_to_ptr.hbm [resolvable:$true] %s475_s25 }
  0x32   : > { %340 = vmatpush.msra.mxu1 %v243_v3  ;;  %v260_v11 = vld [vmem:[#allocation5 + $0x178] sm:$0xff]  ;;  %v239_v12 = vld [vmem:[#allocation5 + $0xd0] sm:$0xff]  ;;  %v258_v15 = vld [vmem:[#allocation5 + $0x168] sm:$0xff]  ;;  %s706_s19 = sshra.s32 %s476_s25, 4  ;;  %s712_s7 = scalar_lea.hbm %s939_s3, 16  ;;  %s707_s19 = int_to_ptr.hbm [resolvable:$true] %s706_s19 }
  0x33   : > { %321 = vmatpush.msra.mxu0 %v226_v4  ;;  %359 = vmatpush.msra.mxu2 %v260_v11  ;;  %v259_v13 = vld [vmem:[#allocation5 + $0x170] sm:$0xff]  ;;  %v276_v14 = vld [vmem:[#allocation5 + $0x1f8] sm:$0xff]  ;;  %v222_v17 = vld [vmem:[#allocation5 + $0x48] sm:$0xff]  ;;  %s708_s28 = scalar_lea.hbm %s707_s19, 8  ;;  %p713_p13 = scmp.lt.s32.totalorder %s707_s19, %s939_s3 }
  0x34   : > { %341 = vmatpush.msra.mxu1 %v242_v5  ;;  %v275_v16 = vld [vmem:[#allocation5 + $0x1f0] sm:$0xff]  ;;  %v238_v18 = vld [vmem:[#allocation5 + $0xc8] sm:$0xff]  ;;  %379 = vmatpush.msra.mxu3 %v276_v14  ;;  %v257_v19 = vld [vmem:[#allocation5 + $0x160] sm:$0xff]  ;;  %p709_p1 = scmp.ne.s32.totalorder %s707_s19, %s708_s28  ;;  %p714_p8 = scmp.lt.s32.totalorder %s712_s7, %s708_s28 }
  0x35   : > { %322 = vmatpush.msra.mxu0 %v225_v6  ;;  %360 = vmatpush.msra.mxu2 %v259_v13  ;;  %v274_v20 = vld [vmem:[#allocation5 + $0x1e8] sm:$0xff]  ;;  %v221_v21 = vld [vmem:[#allocation5 + $0x40] sm:$0xff]  ;;  %v256_v23 = vld [vmem:[#allocation5 + $0x158] sm:$0xff] }
  0x36   : > { %342 = vmatpush.msra.mxu1 %v241_v7  ;;  %v237_v22 = vld [vmem:[#allocation5 + $0xc0] sm:$0xff]  ;;  %380 = vmatpush.msra.mxu3 %v275_v16  ;;  %v220_v25 = vld [vmem:[#allocation5 + $0x38] sm:$0xff]  ;;  %v255_v27 = vld [vmem:[#allocation5 + $0x150] sm:$0xff]  ;;  %p710_p3 = pnand %p709_p1, %p847_p0  ;;  %p715_p7 = por %p714_p8, %p713_p13 }
  0x37   : > { %323 = vmatpush.msra.mxu0 %v224_v8  ;;  %361 = vmatpush.msra.mxu2 %v258_v15  ;;  %v273_v24 = vld [vmem:[#allocation5 + $0x1e0] sm:$0xff]  ;;  %v236_v26 = vld [vmem:[#allocation5 + $0xb8] sm:$0xff]  ;;  %v219_v29 = vld [vmem:[#allocation5 + $0x30] sm:$0xff] }
  0x38   : > { %343 = vmatpush.msra.mxu1 %v240_v9  ;;  %381 = vmatpush.msra.mxu3 %v274_v20  ;;  %v272_v28 = vld [vmem:[#allocation5 + $0x1d8] sm:$0xff]  ;;  %v235_v30 = vld [vmem:[#allocation5 + $0xb0] sm:$0xff]  ;;  %v254_v31 = vld [vmem:[#allocation5 + $0x148] sm:$0xff]  ;;  %p711_p5 = pneg %p710_p3 }
  0x39   : > { %324 = vmatpush.msra.mxu0 %v223_v10  ;;  %362 = vmatpush.msra.mxu2 %v257_v19  ;;  %v271_v32 = vld [vmem:[#allocation5 + $0x1d0] sm:$0xff]  ;;  %v218_v33 = vld [vmem:[#allocation5 + $0x28] sm:$0xff]  ;;  %v253_v35 = vld [vmem:[#allocation5 + $0x140] sm:$0xff] }
  0x3a   : > { %344 = vmatpush.msra.mxu1 %v239_v12  ;;  %382 = vmatpush.msra.mxu3 %v273_v24  ;;  %v234_v34 = vld [vmem:[#allocation5 + $0xa8] sm:$0xff]  ;;  %v217_v37 = vld [vmem:[#allocation5 + $0x20] sm:$0xff]  ;;  %v252_v39 = vld [vmem:[#allocation5 + $0x138] sm:$0xff]  ;;  %p716_p9 = pnand %p715_p7, %p711_p5 }
  0x3b   : > { %325 = vmatpush.msra.mxu0 %v222_v17  ;;  %363 = vmatpush.msra.mxu2 %v256_v23  ;;  %v270_v36 = vld [vmem:[#allocation5 + $0x1c8] sm:$0xff]  ;;  %v233_v38 = vld [vmem:[#allocation5 + $0xa0] sm:$0xff]  ;;  %v216_v41 = vld [vmem:[#allocation5 + $0x18] sm:$0xff] }
  0x3c   : > { %345 = vmatpush.msra.mxu1 %v238_v18  ;;  %383 = vmatpush.msra.mxu3 %v272_v28  ;;  %v269_v40 = vld [vmem:[#allocation5 + $0x1c0] sm:$0xff]  ;;  %v232_v42 = vld [vmem:[#allocation5 + $0x98] sm:$0xff]  ;;  %v251_v43 = vld [vmem:[#allocation5 + $0x130] sm:$0xff] }
  0x3d   : > { %326 = vmatpush.msra.mxu0 %v221_v21  ;;  %364 = vmatpush.msra.mxu2 %v255_v27  ;;  %v268_v44 = vld [vmem:[#allocation5 + $0x1b8] sm:$0xff]  ;;  %v215_v45 = vld [vmem:[#allocation5 + $0x10] sm:$0xff]  ;;  %v250_v47 = vld [vmem:[#allocation5 + $0x128] sm:$0xff] }
  0x3e   : > { %346 = vmatpush.msra.mxu1 %v237_v22  ;;  %384 = vmatpush.msra.mxu3 %v271_v32  ;;  %v231_v46 = vld [vmem:[#allocation5 + $0x90] sm:$0xff]  ;;  %v214_v49 = vld [vmem:[#allocation5 + $0x8] sm:$0xff]  ;;  %v249_v51 = vld [vmem:[#allocation5 + $0x120] sm:$0xff] }
  0x3f   : > { %327 = vmatpush.msra.mxu0 %v220_v25  ;;  %365 = vmatpush.msra.mxu2 %v254_v31  ;;  %v267_v48 = vld [vmem:[#allocation5 + $0x1b0] sm:$0xff]  ;;  %v230_v50 = vld [vmem:[#allocation5 + $0x88] sm:$0xff]  ;;  %v213_v53 = vld [vmem:[#allocation5] sm:$0xff] }
  0x40   : > { %347 = vmatpush.msra.mxu1 %v236_v26  ;;  %385 = vmatpush.msra.mxu3 %v270_v36  ;;  %v266_v52 = vld [vmem:[#allocation5 + $0x1a8] sm:$0xff]  ;;  %v229_v54 = vld [vmem:[#allocation5 + $0x80] sm:$0xff]  ;;  %v292_v55 = vld [vmem:[#allocation5 + $0x278] sm:$0xff] }
  0x41   : > { %328 = vmatpush.msra.mxu0 %v219_v29  ;;  %366 = vmatpush.msra.mxu2 %v253_v35  ;;  %v308_v56 = vld [vmem:[#allocation5 + $0x2f8] sm:$0xff]  ;;  %v265_v58 = vld [vmem:[#allocation5 + $0x1a0] sm:$0xff]  ;;  %v291_v59 = vld [vmem:[#allocation5 + $0x270] sm:$0xff] }
  0x42   : > { %348 = vmatpush.msra.mxu1 %v235_v30  ;;  %386 = vmatpush.msra.mxu3 %v269_v40  ;;  %v248_v57 = vld [vmem:[#allocation5 + $0x118] sm:$0xff]  ;;  %v307_v60 = vld [vmem:[#allocation5 + $0x2f0] sm:$0xff]  ;;  %v290_v63 = vld [vmem:[#allocation5 + $0x268] sm:$0xff] }
  0x43   : > { %329 = vmatpush.msra.mxu0 %v218_v33  ;;  %367 = vmatpush.msra.mxu2 %v252_v39  ;;  %v247_v61 = vld [vmem:[#allocation5 + $0x110] sm:$0xff]  ;;  %v264_v62 = vld [vmem:[#allocation5 + $0x198] sm:$0xff]  ;;  %v306_v0 = vld [vmem:[#allocation5 + $0x2e8] sm:$0xff] }
  0x44   : > { %349 = vmatpush.msra.mxu1 %v234_v34  ;;  %387 = vmatpush.msra.mxu3 %v268_v44  ;;  %v246_v1 = vld [vmem:[#allocation5 + $0x108] sm:$0xff]  ;;  %v263_v2 = vld [vmem:[#allocation5 + $0x190] sm:$0xff]  ;;  %v289_v3 = vld [vmem:[#allocation5 + $0x260] sm:$0xff] }
  0x45   : > { %330 = vmatpush.msra.mxu0 %v217_v37  ;;  %368 = vmatpush.msra.mxu2 %v251_v43  ;;  %v305_v4 = vld [vmem:[#allocation5 + $0x2e0] sm:$0xff]  ;;  %v262_v6 = vld [vmem:[#allocation5 + $0x188] sm:$0xff]  ;;  %v288_v7 = vld [vmem:[#allocation5 + $0x258] sm:$0xff] }
  0x46   : > { %350 = vmatpush.msra.mxu1 %v233_v38  ;;  %388 = vmatpush.msra.mxu3 %v267_v48  ;;  %v245_v5 = vld [vmem:[#allocation5 + $0x100] sm:$0xff]  ;;  %v304_v8 = vld [vmem:[#allocation5 + $0x2d8] sm:$0xff]  ;;  %v287_v11 = vld [vmem:[#allocation5 + $0x250] sm:$0xff] }
  0x47   : > { %331 = vmatpush.msra.mxu0 %v216_v41  ;;  %369 = vmatpush.msra.mxu2 %v250_v47  ;;  %v208_v9 = vld [vmem:[%s882_s16 + $0x10] sm:$0xff]  ;;  %v303_v12 = vld [vmem:[#allocation5 + $0x2d0] sm:$0xff]  ;;  %v310_v13 = vld [vmem:[#allocation5 + $0x308] sm:$0xff] }
  0x48   : > { %351 = vmatpush.msra.mxu1 %v232_v42  ;;  %389 = vmatpush.msra.mxu3 %v266_v52  ;;  %v261_v10 = vld [vmem:[#allocation5 + $0x180] sm:$0xff]  ;;  %v206_v14 = vld [vmem:[%s882_s16] sm:$0xff]  ;;  %v207_v18 = vld [vmem:[%s882_s16 + $0x8] sm:$0xff] }
  0x49   : > { %332 = vmatpush.msra.mxu0 %v215_v45  ;;  %370 = vmatpush.msra.mxu2 %v249_v51  ;;  %v286_v15 = vld [vmem:[#allocation5 + $0x248] sm:$0xff]  ;;  %v285_v19 = vld [vmem:[#allocation5 + $0x240] sm:$0xff]  ;;  %v284_v22 = vld [vmem:[#allocation5 + $0x238] sm:$0xff] }
  0x4a   : > { %352 = vmatpush.msra.mxu1 %v231_v46  ;;  %390 = vmatpush.msra.mxu3 %v265_v58  ;;  %v302_v16 = vld [vmem:[#allocation5 + $0x2c8] sm:$0xff]  ;;  %v301_v20 = vld [vmem:[#allocation5 + $0x2c0] sm:$0xff]  ;;  %v300_v23 = vld [vmem:[#allocation5 + $0x2b8] sm:$0xff] }
  0x4b   : > { %333 = vmatpush.msra.mxu0 %v214_v49  ;;  %371 = vmatpush.msra.mxu2 %v248_v57  ;;  %v209_v17 = vld [vmem:[%s882_s16 + $0x18] sm:$0xff]  ;;  %v212_v24 = vld [vmem:[%s882_s16 + $0x30] sm:$0xff]  ;;  %v283_v25 = vld [vmem:[#allocation5 + $0x230] sm:$0xff] }
  0x4c   : > { %353 = vmatpush.msra.mxu1 %v230_v50  ;;  %391 = vmatpush.msra.mxu3 %v264_v62  ;;  %v309_v21 = vld [vmem:[#allocation5 + $0x300] sm:$0xff]  ;;  %v299_v26 = vld [vmem:[#allocation5 + $0x2b0] sm:$0xff]  ;;  %v282_v27 = vld [vmem:[#allocation5 + $0x228] sm:$0xff] }
  0x4d   : > { %334 = vmatpush.msra.mxu0 %v213_v53  ;;  %372 = vmatpush.msra.mxu2 %v247_v61  ;;  %v298_v28 = vld [vmem:[#allocation5 + $0x2a8] sm:$0xff]  ;;  %v281_v29 = vld [vmem:[#allocation5 + $0x220] sm:$0xff]  ;;  %v280_v31 = vld [vmem:[#allocation5 + $0x218] sm:$0xff] }
  0x4e   : > { %354 = vmatpush.msra.mxu1 %v229_v54  ;;  %392 = vmatpush.msra.mxu3 %v263_v2  ;;  %v297_v30 = vld [vmem:[#allocation5 + $0x2a0] sm:$0xff]  ;;  %v296_v32 = vld [vmem:[#allocation5 + $0x298] sm:$0xff]  ;;  %v279_v33 = vld [vmem:[#allocation5 + $0x210] sm:$0xff] }
  0x4f   : > { %399 = vmatpush.msrb.mxu0 %v292_v55  ;;  %373 = vmatpush.msra.mxu2 %v246_v1  ;;  %v295_v34 = vld [vmem:[#allocation5 + $0x290] sm:$0xff]  ;;  %v278_v35 = vld [vmem:[#allocation5 + $0x208] sm:$0xff]  ;;  %v277_v37 = vld [vmem:[#allocation5 + $0x200] sm:$0xff] }
  0x50   : > { %419 = vmatpush.msrb.mxu1 %v308_v56  ;;  %393 = vmatpush.msra.mxu3 %v262_v6  ;;  %v294_v36 = vld [vmem:[#allocation5 + $0x288] sm:$0xff]  ;;  %v293_v38 = vld [vmem:[#allocation5 + $0x280] sm:$0xff]  ;;  %v211_v40 = vld [vmem:[%s882_s16 + $0x28] sm:$0xff] }
  0x51   : > { %400 = vmatpush.msrb.mxu0 %v291_v59  ;;  %374 = vmatpush.msra.mxu2 %v245_v5  ;;  %v210_v39 = vld [vmem:[%s882_s16 + $0x20] sm:$0xff] }
  0x52   : > { %420 = vmatpush.msrb.mxu1 %v307_v60  ;;  %375 = vmatmul.f32.vlgmr.msra.gmra.mxu2 %v208_v9  ;;  %v631_v41 = vld [vmem:[%s938_s2] ss:$0 sm:$0xff] }
  0x53   : > { %401 = vmatpush.msrb.mxu0 %v290_v63  ;;  %394 = vmatpush.msra.mxu3 %v261_v10 }
  0x54   : > { %421 = vmatpush.msrb.mxu1 %v306_v0  ;;  %453 = vmatpush.msrb.mxu2 %v310_v13 }
  0x55   : > { %402 = vmatpush.msrb.mxu0 %v289_v3  ;;  %395 = vmatmul.f32.vlgmr.msra.gmra.mxu3 %v209_v17 }
  0x56   : > { %422 = vmatpush.msrb.mxu1 %v305_v4  ;;  %335 = vmatmul.f32.vlgmr.msra.gmra.mxu0 %v206_v14 }
  0x57   : > { %403 = vmatpush.msrb.mxu0 %v288_v7  ;;  %355 = vmatmul.f32.vlgmr.msra.gmra.mxu1 %v207_v18 }
  0x58   : > { %423 = vmatpush.msrb.mxu1 %v304_v8  ;;  %454 = vmatpush.msrb.mxu2 %v309_v21 }
  0x59   : > { %404 = vmatpush.msrb.mxu0 %v287_v11 }
  0x5a   : > { %424 = vmatpush.msrb.mxu1 %v303_v12  ;;  %564 = vmatmul.msk.f32.vlgmr.msrb.gmra.mxu2 %vm315_vm0, %v212_v24 }
  0x5b   : > { %405 = vmatpush.msrb.mxu0 %v286_v15 }
  0x5c   : > { %425 = vmatpush.msrb.mxu1 %v302_v16 }
  0x5d   : > { %406 = vmatpush.msrb.mxu0 %v285_v19 }
  0x5e   : > { %426 = vmatpush.msrb.mxu1 %v301_v20 }
  0x5f   : > { %407 = vmatpush.msrb.mxu0 %v284_v22 }
  0x60   : > { %427 = vmatpush.msrb.mxu1 %v300_v23 }
  0x61   : > { %408 = vmatpush.msrb.mxu0 %v283_v25 }
  0x62   : > { %428 = vmatpush.msrb.mxu1 %v299_v26 }
  0x63   : > { %409 = vmatpush.msrb.mxu0 %v282_v27 }
  0x64   : > { %429 = vmatpush.msrb.mxu1 %v298_v28 }
  0x65   : > { %410 = vmatpush.msrb.mxu0 %v281_v29 }
  0x66   : > { %430 = vmatpush.msrb.mxu1 %v297_v30 }
  0x67   : > { %411 = vmatpush.msrb.mxu0 %v280_v31 }
  0x68   : > { %431 = vmatpush.msrb.mxu1 %v296_v32 }
  0x69   : > { %412 = vmatpush.msrb.mxu0 %v279_v33 }
  0x6a   : > { %432 = vmatpush.msrb.mxu1 %v295_v34 }
  0x6b   : > { %413 = vmatpush.msrb.mxu0 %v278_v35 }
  0x6c   : > { %433 = vmatpush.msrb.mxu1 %v294_v36 }
  0x6d   : > { %414 = vmatpush.msrb.mxu0 %v277_v37 }
  0x6e   : > { %434 = vmatpush.msrb.mxu1 %v293_v38  ;;  %415 = vmatmul.f32.vlgmr.msrb.gmra.mxu0 %v210_v39 }
  0x6f   : > { %435 = vmatmul.f32.vlgmr.msrb.gmra.mxu1 %v211_v40 }
  0xd3   : > { %v336_v42 = vpop.f32.mrf.mxu0 }
  0xd4   : > { %v337_v43 = vadd.f32 %v631_v41, %v336_v42  ;;  %v356_v44 = vpop.f32.mrf.mxu1 }
  0xd5   : > { %v376_v46 = vpop.f32.mrf.mxu2 }
  0xd6   : > { %v357_v45 = vadd.f32 %v356_v44, %v337_v43 }
  0xd8   : > { %v377_v47 = vadd.f32 %v376_v46, %v357_v45  ;;  %v396_v48 = vpop.f32.mrf.mxu3 }
  0xda   : > { %v397_v49 = vadd.f32 %v396_v48, %v377_v47 }
  0xdd   : > { %v456_v53 = vpop.f32.mrf.mxu2 }
  0xeb   : > { %v416_v50 = vpop.f32.mrf.mxu0 }
  0xec   : > { %v436_v51 = vpop.f32.mrf.mxu1  ;;  %v417_v52 = vadd.f32 %v416_v50, %v397_v49 }
  0xee   : > { %v437_v54 = vadd.f32 %v436_v51, %v417_v52 }
  0xf0   : > { %v457_v55 = vadd.f32 %v456_v53, %v437_v54 }
  0xf2   : > { %459 = vst [vmem:[%s205_s23] sm:$0xff] %v457_v55 }
  0xf3   : > { %719 = shalt.err (!%p716_p9)
}
  0xf4   : > { %578 = dma.vmem_to_hbm [thread:$0]  (%p847_p0), %s474_s24, 128, %s476_s25, %s461_s27  }
  0xf5 PF: > { %s487_s5 = sand.u32 1, %s750_s12   ;;  %p945_p10 = scmp.ge.s32.totalorder %s762_s15, 2 }
  0xf6   : > { %s488_s20 = scalar_lea.sflag [#allocation4], %s487_s5 }
  0xf7   : > { %p589_p11 = pnand %p945_p10, %p853_p6 }
  0xf9   : > { %p590_p12 = pneg %p589_p11 }
  0xfb   : > { %745 = dma.done.wait (%p590_p12), %s488_s20, 128  }
  0xfc   : > { %747 = vsyncadd (%p590_p12), %s488_s20, 4294967168  ;;  %p17_p2 = scmp.ge.s32.totalorder %s827_s26, 4   ;;  %s946_s12 = smov %s754_s13 }
  0xfd   : > { %s947_s13 = smov %s758_s14  ;;  %s948_s14 = smov %s839_s29 }
  0xfe   : > { %s949_s15 = smov %s827_s26  ;;  %19 = sbr.rel (!%p17_p2) target bundleno = 6 (0x6), region = 81 }
 0x103   :  { %494 = vsyncpa [#allocation3], 1 }
 0x104   :  { %496 = vsyncpa [#allocation3 + $0x1], 1 }
 0x105   :  { %497 = vsyncpa [#allocation6], 1 }
 0x106   :  { %498 = vsyncpa [#allocation4], 1 }
 0x107   :  { %500 = vsyncpa [#allocation4 + $0x1], 1 }

</bundles_post_ra>
